<compile_context>
chip_gen: v7x
topology: tpu7x:2x2x1
jax: 0.10.0
libtpu: 0.0.40
codegen_flags: <defaults>
</compile_context>

<pallas_src>
import jax
import jax.numpy as jnp
from jax.experimental import pallas as pl
from jax.experimental.pallas import tpu as pltpu


def _round_up(v, m):
    return ((v + m - 1) // m) * m


def _pick_tile(dim_padded, cap):
    """Largest 128-multiple divisor of `dim_padded` that is <= cap (>=128)."""
    n = dim_padded // 128
    c = max(cap // 128, 1)
    best = 1
    for d in range(1, min(n, c) + 1):
        if n % d == 0:
            best = d
    return best * 128


# ----------------------------- kernels --------------------------------------


def _mm_kernel_fused_k(x_ref, y_ref, o_ref):
    # x_ref: (TM, D_p) bf16, y_ref: (TN, D_p) bf16, o_ref: (TM, TN).
    # Whole contraction in one MXU dot: no scratch, no init/store phases.
    o_ref[...] = jax.lax.dot_general(
        x_ref[...],
        y_ref[...],
        dimension_numbers=(((1,), (1,)), ((), ())),
        preferred_element_type=jnp.float32,
    ).astype(o_ref.dtype)


def _mm_kernel_multi_k_f32(x_ref, y_ref, o_ref):
    # f32 output: accumulate directly into the output block (it is revisited
    # across the innermost k axis) — no VMEM scratch, no final copy.
    k = pl.program_id(3)
    partial = jax.lax.dot_general(
        x_ref[...],
        y_ref[...],
        dimension_numbers=(((1,), (1,)), ((), ())),
        preferred_element_type=jnp.float32,
    )

    @pl.when(k == 0)
    def _init():
        o_ref[...] = partial

    @pl.when(k > 0)
    def _acc():
        o_ref[...] += partial


def _mm_kernel_multi_k_scratch(x_ref, y_ref, o_ref, acc_ref):
    # Narrow output dtype: accumulate in f32 scratch, cast on the last k step.
    k = pl.program_id(3)

    @pl.when(k == 0)
    def _zero():
        acc_ref[...] = jnp.zeros_like(acc_ref)

    acc_ref[...] += jax.lax.dot_general(
        x_ref[...],
        y_ref[...],
        dimension_numbers=(((1,), (1,)), ((), ())),
        preferred_element_type=jnp.float32,
    )

    @pl.when(k == pl.num_programs(3) - 1)
    def _store():
        o_ref[...] = acc_ref[...].astype(o_ref.dtype)


# ----------------------------- wrapper ---------------------------------------

# Conservative per-call VMEM budget for tile selection: fits v5e's 16 MiB
# scoped default and leaves headroom inside v6e (32/128 MiB) / v7x (32/64 MiB).
_VMEM_TILE_BUDGET = 14 * 1024 * 1024


def matrix_attention_scores(x, y, *, tm=512, tn=512, tk=512,
                            out_dtype=jnp.float32, collapse_k=None):
    """Pallas kernel: per-batch similarity matrix scores[b] = x[b] @ y[b].T.

    x: (B, Sx, D), y: (B, Sy, D) -> (B, Sx, Sy) in `out_dtype`.
    Inputs are computed in bf16 on the MXU with f32 accumulation.  Pass
    out_dtype=jnp.bfloat16 to halve output writeback bytes when the consumer
    tolerates it.
    """
    B, Sx, D = x.shape
    B2, Sy, D2 = y.shape
    assert B == B2 and D == D2, "batch / feature dims must match"

    # bf16 operands for MXU throughput; skip the cast if already bf16.
    if x.dtype != jnp.bfloat16:
        x = x.astype(jnp.bfloat16)
    if y.dtype != jnp.bfloat16:
        y = y.astype(jnp.bfloat16)

    # 128-granular padding only (lane/sublane alignment); zero-padding the
    # contraction axis contributes nothing to the dots.
    Sx_p = _round_up(Sx, 128)
    Sy_p = _round_up(Sy, 128)
    D_p = _round_up(D, 128)
    if (Sx_p, D_p) != (Sx, D):
        x = jnp.pad(x, ((0, 0), (0, Sx_p - Sx), (0, D_p - D)))
    if (Sy_p, D_p) != (Sy, D):
        y = jnp.pad(y, ((0, 0), (0, Sy_p - Sy), (0, D_p - D)))

    # Tiles are exact divisors of the padded dims (no extra padding waste).
    TM = _pick_tile(Sx_p, tm)
    TN = _pick_tile(Sy_p, tn)

    out_itemsize = jnp.dtype(out_dtype).itemsize
    out_is_f32 = jnp.dtype(out_dtype) == jnp.dtype(jnp.float32)

    # Fused-K VMEM need: double-buffered bf16 x/y tiles spanning the whole
    # contraction + double-buffered output tile.
    fused_vmem = 2 * 2 * D_p * (TM + TN) + 2 * out_itemsize * TM * TN
    if collapse_k is None:
        collapse_k = fused_vmem <= _VMEM_TILE_BUDGET

    if collapse_k:
        grid = (B, Sx_p // TM, Sy_p // TN)
        in_specs = [
            # x block index (b, i) is constant across the whole j sweep, so
            # the x tile is DMA'd once per i and stays resident in VMEM.
            pl.BlockSpec((pl.Squeezed(), TM, D_p), lambda b, i, j: (b, i, 0)),
            pl.BlockSpec((pl.Squeezed(), TN, D_p), lambda b, i, j: (b, j, 0)),
        ]
        out_specs = pl.BlockSpec((pl.Squeezed(), TM, TN),
                                 lambda b, i, j: (b, i, j))
        kernel = _mm_kernel_fused_k
        scratch_shapes = []
        dim_sem = ("parallel", "parallel", "parallel")
        bytes_accessed = (B * Sx_p * D_p * 2                        # x once
                          + B * Sy_p * D_p * 2 * (Sx_p // TM)       # y per i
                          + B * Sx_p * Sy_p * out_itemsize)         # output
    else:
        TK = _pick_tile(D_p, tk)
        grid = (B, Sx_p // TM, Sy_p // TN, D_p // TK)
        in_specs = [
            pl.BlockSpec((pl.Squeezed(), TM, TK),
                         lambda b, i, j, k: (b, i, k)),
            pl.BlockSpec((pl.Squeezed(), TN, TK),
                         lambda b, i, j, k: (b, j, k)),
        ]
        out_specs = pl.BlockSpec((pl.Squeezed(), TM, TN),
                                 lambda b, i, j, k: (b, i, j))
        if out_is_f32:
            kernel = _mm_kernel_multi_k_f32
            scratch_shapes = []
        else:
            kernel = _mm_kernel_multi_k_scratch
            scratch_shapes = [pltpu.VMEM((TM, TN), jnp.float32)]
        dim_sem = ("parallel", "parallel", "parallel", "arbitrary")
        # With k innermost, the x block index changes every step: x is
        # re-streamed once per j sweep and y once per i sweep.
        bytes_accessed = (B * Sx_p * D_p * 2 * (Sy_p // TN)
                          + B * Sy_p * D_p * 2 * (Sx_p // TM)
                          + B * Sx_p * Sy_p * out_itemsize)

    cost = pl.CostEstimate(
        flops=2 * B * Sx_p * Sy_p * D_p,
        transcendentals=0,
        bytes_accessed=int(bytes_accessed),
    )

    out = pl.pallas_call(
        kernel,
        out_shape=jax.ShapeDtypeStruct((B, Sx_p, Sy_p), out_dtype),
        grid_spec=pltpu.PrefetchScalarGridSpec(
            num_scalar_prefetch=0,
            grid=grid,
            in_specs=in_specs,
            out_specs=out_specs,
            scratch_shapes=scratch_shapes,
        ),
        compiler_params=pltpu.CompilerParams(dimension_semantics=dim_sem),
        cost_estimate=cost,
    )(x, y)

    if (Sx_p, Sy_p) != (Sx, Sy):
        out = out[:, :Sx, :Sy]
    return out


def matrix_attention_forward(*inputs):
    """Exact semantics of the reference nn.Module.forward: it is a stub."""
    # TODO(synk): reference forward body is empty (`return` -> None); no ops to translate.
    return None


if __name__ == "__main__":
    key = jax.random.PRNGKey(0)
    kx, ky, kx2, ky2 = jax.random.split(key, 4)

    # Exact-semantics path (stub module): returns None, no parameters.
    assert matrix_attention_forward() is None

    def _ref(x, y):
        # Reference computed the same way the kernel does: bf16 operands,
        # f32 accumulation.
        return jnp.einsum(
            "bqd,bkd->bqk",
            x.astype(jnp.bfloat16), y.astype(jnp.bfloat16),
            preferred_element_type=jnp.float32,
        )

    # --- Small, module-consistent shapes (fused-K path) -------------------
    B, Sx, Sy, D = 2, 8, 8, 32
    x = jax.random.normal(kx, (B, Sx, D), dtype=jnp.float32)
    y = jax.random.normal(ky, (B, Sy, D), dtype=jnp.float32)

    scores = matrix_attention_scores(x, y)
    jax.block_until_ready(scores)
    assert scores.shape == (B, Sx, Sy)
    assert jnp.allclose(scores, _ref(x, y), atol=2e-2, rtol=2e-2)

    # --- Medium, non-divisible shapes: 128-granular padding, divisor tiles --
    B2, Sx2, Sy2, D2 = 2, 300, 200, 600
    x2 = jax.random.normal(kx2, (B2, Sx2, D2), dtype=jnp.float32)
    y2 = jax.random.normal(ky2, (B2, Sy2, D2), dtype=jnp.float32)
    ref2 = _ref(x2, y2)

    # Auto path: contraction fits VMEM -> fused-K kernel (no scratch).
    s2 = matrix_attention_scores(x2, y2)
    jax.block_until_ready(s2)
    assert s2.shape == (B2, Sx2, Sy2)
    assert jnp.allclose(s2, ref2, atol=5e-2, rtol=5e-2)

    # K-tiled fallback, f32 output accumulated directly into the output block.
    s3 = matrix_attention_scores(x2, y2, collapse_k=False)
    jax.block_until_ready(s3)
    assert jnp.allclose(s3, ref2, atol=5e-2, rtol=5e-2)

    # K-tiled fallback with narrow output dtype (f32 scratch accumulator).
    s4 = matrix_attention_scores(x2, y2, collapse_k=False,
                                 out_dtype=jnp.bfloat16)
    jax.block_until_ready(s4)
    assert jnp.allclose(s4.astype(jnp.float32), ref2, atol=0.5, rtol=2e-2)

    print("KERNEL_OK")
</pallas_src>

<mosaic_0001>
module attributes {stable_mosaic.version = 11 : i64} {
  func.func @_mm_kernel_fused_k(%arg0: i32, %arg1: i32, %arg2: i32, %arg3: memref<1x128x128xbf16, #tpu.memory_space<vmem>>, %arg4: memref<1x128x128xbf16, #tpu.memory_space<vmem>>, %arg5: memref<1x128x128xf32, #tpu.memory_space<vmem>>) attributes {dimension_semantics = [#tpu.dimension_semantics<parallel>, #tpu.dimension_semantics<parallel>, #tpu.dimension_semantics<parallel>], iteration_bounds = array<i64: 2, 1, 1>, scalar_prefetch = 0 : i64, scratch_operands = 0 : i64, tpu.core_type = #tpu.core_type<tc>, window_params = [{transform_indices = @transform_0, window_bounds = array<i64: 1, 128, 128>}, {transform_indices = @transform_1, window_bounds = array<i64: 1, 128, 128>}, {transform_indices = @transform_2, window_bounds = array<i64: 1, 128, 128>}]} {
    %c0 = arith.constant 0 : index
    %c0_0 = arith.constant 0 : index
    %c0_1 = arith.constant 0 : index
    %0 = vector.load %arg3[%c0, %c0_0, %c0_1] : memref<1x128x128xbf16, #tpu.memory_space<vmem>>, vector<1x128x128xbf16>
    %1 = vector.shape_cast %0 : vector<1x128x128xbf16> to vector<128x128xbf16>
    %c0_2 = arith.constant 0 : index
    %c0_3 = arith.constant 0 : index
    %c0_4 = arith.constant 0 : index
    %2 = vector.load %arg4[%c0_2, %c0_3, %c0_4] : memref<1x128x128xbf16, #tpu.memory_space<vmem>>, vector<1x128x128xbf16>
    %3 = vector.shape_cast %2 : vector<1x128x128xbf16> to vector<128x128xbf16>
    %cst = arith.constant dense<0.000000e+00> : vector<128x128xf32>
    %4 = tpu.matmul %1, %3, %cst {dimension_numbers = #tpu.dot_dimension_numbers<[1], [1], [0], [0], [0, 0, 1, 0], [], []>} : vector<128x128xbf16>, vector<128x128xbf16>, vector<128x128xf32> -> vector<128x128xf32>
    %c0_5 = arith.constant 0 : index
    %c0_6 = arith.constant 0 : index
    %c0_7 = arith.constant 0 : index
    %5 = vector.load %arg5[%c0_5, %c0_6, %c0_7] : memref<1x128x128xf32, #tpu.memory_space<vmem>>, vector<1x128x128xf32>
    %6 = vector.shape_cast %5 : vector<1x128x128xf32> to vector<128x128xf32>
    %7 = vector.shape_cast %4 : vector<128x128xf32> to vector<1x128x128xf32>
    tpu.vector_store %arg5[%c0_5, %c0_6, %c0_7], %7 {strides = array<i32>} : memref<1x128x128xf32, #tpu.memory_space<vmem>>, vector<1x128x128xf32>,
    return
  }
  func.func @transform_0(%arg0: i32, %arg1: i32, %arg2: i32) -> (i32, i32, i32) {
    %c0_i32 = arith.constant 0 : i32
    %c0_i32_0 = arith.constant 0 : i32
    return %arg0, %arg1, %c0_i32 : i32, i32, i32
  }
  func.func @transform_1(%arg0: i32, %arg1: i32, %arg2: i32) -> (i32, i32, i32) {
    %c0_i32 = arith.constant 0 : i32
    %c0_i32_0 = arith.constant 0 : i32
    return %arg0, %arg2, %c0_i32 : i32, i32, i32
  }
  func.func @transform_2(%arg0: i32, %arg1: i32, %arg2: i32) -> (i32, i32, i32) {
    %c0_i32 = arith.constant 0 : i32
    return %arg0, %arg1, %arg2 : i32, i32, i32
  }
}

</mosaic_0001>

<bundles_post_ra>
// kernel: tpu_custom_call.1
= control target key start
LH: loop header
LB: loop body
LE: loop exit
PB: predicated region body
PF: predicated region fallthrough
CT: control target
= control target key end

     0   :  { %7 = vsyncpa [#allocation3], 0  ;;  %s1247_s0 = inlined_call_operand.hbm [shape: bf16[2,128,128], index: 0, kind: input, shape index: {}]   ;;  %s1248_s1 = inlined_call_operand.hbm [shape: bf16[2,128,128], index: 1, kind: input, shape index: {}]   ;;  %s1249_s2 = inlined_call_operand.hbm [shape: f32[2,128,128], index: 2, kind: output, shape index: {}]  }
   0x1   :  { %9 = vsyncpa [#allocation3 + $0x1], 0 }
   0x2   :  { %10 = vsyncpa [#allocation6], 0 }
   0x3   :  { %12 = vsyncpa [#allocation6 + $0x1], 0 }
   0x4   :  { %13 = vsyncpa [#allocation4], 0 }
   0x5   :  { %15 = vsyncpa [#allocation4 + $0x1], 0  ;;  %s971_s9 = smov 0   ;;  %s973_s10 = smov 0  }
   0x6   :  { %s975_s11 = smov 0   ;;  %s977_s12 = smov 0  }
   0x7   :  { %s979_s13 = smov 0   ;;  %s981_s14 = smov 0  }
   0x8 LB: > { %s612_s15 = sadd.s32 4294967295, %s947_s14   ;;  %s613_s16 = sadd.s32 4294967294, %s947_s14   ;;  %s947_s14 = sphi %s981_s14, %s21_s14   ;;  %s943_s13 = sphi %s979_s13, %s1267_s13   ;;  %s939_s12 = sphi %s977_s12, %s1266_s12   ;;  %s935_s11 = sphi %s975_s11, %s1265_s11   ;;  %s931_s10 = sphi %s973_s10, %s1264_s10   ;;  %s927_s9 = sphi %s971_s9, %s1263_s9  }
   0x9   : > { %s40_s17 = sadd.s32 1, %s943_s13  ;;  %s49_s18 = sadd.s32 1, %s935_s11 }
   0xa   : > { %p42_p0 = scmp.ge.s32.totalorder %s40_s17, 2  ;;  %p56_p1 = scmp.ne.s32.totalorder %s935_s11, %s931_s10 }
   0xb   : > { %p57_p2 = scmp.eq.s32.totalorder %s947_s14, 0  ;;  %p62_p3 = scmp.ne.s32.totalorder %s931_s10, %s927_s9 }
   0xc   : > { %s1269_s17 = smov (%p42_p0, %s40_s17), 0  ;;  %p63_p5 = scmp.eq.s32.totalorder %s612_s15, 0 }
   0xd   : > { %p1012_p4 = por %p57_p2, %p56_p1  ;;  %s44_s20 = ssub.s32 %s943_s13, %s1269_s17 }
   0xe   : > { %p118_p6 = scmp.eq.s32.totalorder %s612_s15, 1  ;;  %p47_p7 = scmp.eq.s32.totalorder %s44_s20, 0 }
   0xf   : > { %p1018_p8 = por %p63_p5, %p62_p3  ;;  %p124_p10 = scmp.eq.s32.totalorder %s613_s16, 1 }
  0x10   : > { %p1022_p9 = por %p118_p6, %p56_p1  ;;  %p731_p13 = scmp.lt.s32.totalorder %s947_s14, 2 }
  0x11   : > { %s1253_s21 = scalar_select %p1018_p8, 1, 0 }
  0x12   : > { %s1254_s22 = scalar_select %p1022_p9, 1, 0 }
  0x13   : > { %s1027_s23 = scalar_select %p47_p7, %s935_s11, %s49_s18  }
  0x14   : > { %p1029_p11 = por %p124_p10, %p62_p3  ;;  %s1036_s25 = sand.u32 1, %s935_s11  }
  0x15   : > { %s616_s26 = sshll.u32 %s1036_s25, 6  ;;  %s647_s27 = sshll.u32 %s943_s13, 10 }
  0x16   : > { %s1255_s24 = scalar_select %p1029_p11, 1, 0 }
  0x17   : > { %s1045_s30 = scalar_lea.hbm %s1247_s0, %s647_s27  ;;  %s148_s3 = scalar_lea.vmem [#allocation2], %s616_s26 }
  0x18   : > { %s157_s4 = sshll.u32 %s148_s3, 4  ;;  %p1053_p0 = pnand %p731_p13, %p1012_p4  ;;  %s1049_s4 = int_to_ptr.vmem [resolvable:$true] %s157_s4 }
  0x19   : > { %s145_s6 = scalar_lea.sflag [#allocation3], %s1036_s25  ;;  %s801_s7 = scalar_lea.hbm %s1045_s30, 1024 }
  0x1a   : > { %p802_p2 = scmp.ne.s32.totalorder %s1045_s30, %s801_s7  ;;  %p803_p3 = pneg %p1053_p0 }
  0x1b   : > { %s806_s16 = scalar_lea.hbm %s1247_s0, 2048  ;;  %p807_p4 = scmp.lt.u32.totalorder %s1045_s30, %s1247_s0 }
  0x1c   : > { %p804_p5 = pnand %p803_p3, %p802_p2  ;;  %p808_p7 = scmp.lt.u32.totalorder %s806_s16, %s801_s7 }
  0x1d   : > { %p810_p13 = scmp.lt.u32.totalorder %s801_s7, %s1045_s30 }
  0x1e   : > { %p805_p6 = pneg %p804_p5  ;;  %p809_p10 = por %p808_p7, %p807_p4 }
  0x20   : > { %p811_p12 = por %p810_p13, %p809_p10 }
  0x22   : > { %p812_p1 = pnand %p811_p12, %p805_p6 }
  0x24   : > { %815 = shalt.err (!%p812_p1)
}
  0x25   : > { %s816_s20 = scalar_lea.vmem %s1049_s4, 1024  ;;  %s949_s28 = smov [#allocation2]  }
  0x26   : > { %p817_p2 = scmp.ne.s32.totalorder %s1049_s4, %s816_s20  ;;  %s821_s29 = sshll.u32 %s949_s28, 4  ;;  %s822_s29 = int_to_ptr.vmem [resolvable:$false] %s821_s29 }
  0x27   : > { %s823_s3 = scalar_lea.vmem %s822_s29, 2048  ;;  %p824_p9 = scmp.lt.s32.totalorder %s1049_s4, %s822_s29 }
  0x28   : > { %p819_p5 = pnand %p817_p2, %p803_p3  ;;  %p825_p4 = scmp.lt.s32.totalorder %s823_s3, %s816_s20 }
  0x2a   : > { %p820_p11 = pneg %p819_p5  ;;  %p826_p7 = por %p825_p4, %p824_p9 }
  0x2c   : > { %p827_p10 = pnand %p826_p7, %p820_p11 }
  0x2e   : > { %830 = shalt.err (!%p827_p10)
}
  0x2f   : > { %s950_s7 = smov 64   ;;  %s951_s8 = smov 4  }
  0x30   : > { %723 = dma.hbm_to_vmem [thread:$0]  (!%p1053_p0), %s1045_s30, 1024, %s1049_s4, %s145_s6, %s950_s7, %s950_s7, %s951_s8  }
  0x31   : > { %p188_p9 = scmp.lt.s32.totalorder %s947_s14, 3  ;;  %s1095_s18 = scalar_lea.hbm %s1248_s1, %s647_s27 }
  0x32   : > { %p1257_p11 = scmp.ge.s32.totalorder %s947_s14, 1  ;;  %s171_s20 = scalar_lea.vmem [#allocation5], %s616_s26 }
  0x33   : > { %s180_s28 = sshll.u32 %s171_s20, 4  ;;  %s168_s30 = scalar_lea.sflag [#allocation6], %s1036_s25  ;;  %s1105_s28 = int_to_ptr.vmem [resolvable:$true] %s180_s28 }
  0x34   : > { %p1099_p12 = pnand %p1257_p11, %p188_p9  ;;  %s831_s4 = scalar_lea.hbm %s1095_s18, 1024 }
  0x35   : > { %p832_p1 = scmp.ne.s32.totalorder %s1095_s18, %s831_s4  ;;  %s836_s29 = scalar_lea.hbm %s1248_s1, 2048 }
  0x36   : > { %p837_p2 = scmp.lt.u32.totalorder %s1095_s18, %s1248_s1  ;;  %p838_p5 = scmp.lt.u32.totalorder %s836_s29, %s831_s4 }
  0x37   : > { %p834_p6 = pnand %p832_p1, %p803_p3  ;;  %p840_p7 = scmp.lt.u32.totalorder %s831_s4, %s1095_s18 }
  0x38   : > { %p839_p4 = por %p838_p5, %p837_p2 }
  0x39   : > { %p835_p13 = pneg %p834_p6 }
  0x3a   : > { %p841_p10 = por %p840_p7, %p839_p4 }
  0x3c   : > { %p842_p9 = pnand %p841_p10, %p835_p13 }
  0x3e   : > { %845 = shalt.err (!%p842_p9)
}
  0x3f   : > { %s846_s26 = scalar_lea.vmem %s1105_s28, 1024  ;;  %s952_s16 = smov [#allocation5]  }
  0x40   : > { %p847_p11 = scmp.ne.s32.totalorder %s1105_s28, %s846_s26  ;;  %s851_s20 = sshll.u32 %s952_s16, 4  ;;  %s852_s20 = int_to_ptr.vmem [resolvable:$false] %s851_s20 }
  0x41   : > { %s853_s27 = scalar_lea.vmem %s852_s20, 2048  ;;  %p854_p8 = scmp.lt.s32.totalorder %s1105_s28, %s852_s20 }
  0x42   : > { %p849_p1 = pnand %p847_p11, %p803_p3  ;;  %p855_p2 = scmp.lt.s32.totalorder %s853_s27, %s846_s26 }
  0x44   : > { %p850_p6 = pneg %p849_p1  ;;  %p856_p5 = por %p855_p2, %p854_p8 }
  0x46   : > { %p857_p4 = pnand %p856_p5, %p850_p6 }
  0x48   : > { %860 = shalt.err (!%p857_p4)
}
  0x49   : > { %726 = dma.hbm_to_vmem [thread:$0]  (!%p1053_p0), %s1095_s18, 1024, %s1105_s28, %s168_s30, %s950_s7, %s950_s7, %s951_s8  }
  0x4a   : > { %192 = sbr.rel (%p1099_p12) target bundleno = 387 (0x183), region = 28  ;;  %s1139_s4 = sand.u32 (!%p1099_p12), 1, %s931_s10  }
  0x4b   : > { %s623_s6 = sshll.u32 (!%p1099_p12), %s1139_s4, 6  ;;  %s195_s29 = scalar_lea.sflag (!%p1099_p12), [#allocation3], %s1139_s4 }
  0x4c   : > { %s1143_s5 = scalar_lea.vmem (!%p1099_p12), [#allocation2], %s623_s6  ;;  %p1259_p8 = scmp.ne.s32.totalorder (!%p1099_p12), %s1253_s21, 0 }
  0x51   : > { %914 = dma.done.wait (%p1259_p8), %s195_s29, 1024  }
  0x52   : > { %916 = vsyncadd (%p1259_p8), %s195_s29, 4294966272  ;;  %s204_s25 = scalar_lea.sflag [#allocation6], %s1139_s4  ;;  %s1150_s7 = scalar_lea.vmem [#allocation5], %s623_s6 }
  0x53   : > { %918 = dma.done.wait (%p1259_p8), %s204_s25, 1024  }
  0x54   : > { %920 = vsyncadd (%p1259_p8), %s204_s25, 4294966272  ;;  %v785_v0 = vld [vmem:[%s1150_s7] sm:$0xff]   ;;  %v786_v1 = vld [vmem:[%s1150_s7 + $0x8] sm:$0xff]   ;;  %s625_s21 = sshll.u32 %s1139_s4, 7  ;;  %s649_s18 = sshll.u32 %s939_s12, 11 }
  0x55   : > { %666 = vmatprep.subr.bf16.mxu0 %v785_v0  ;;  %698 = vmatprep.subr.bf16.mxu1 %v785_v0  ;;  %v787_v2 = vld [vmem:[%s1150_s7 + $0x10] sm:$0xff]   ;;  %v793_v3 = vld [vmem:[%s1143_s5] sm:$0xff]   ;;  %v788_v5 = vld [vmem:[%s1150_s7 + $0x18] sm:$0xff]   ;;  %s1173_s8 = scalar_lea.vmem [#allocation7], %s625_s21  ;;  %s1190_s3 = scalar_lea.hbm %s1249_s2, %s649_s18 }
  0x56   : > { %667 = vmatpush3.bf16.xpose.msra.mxu0 %v785_v0  ;;  %706 = vmatpush3.bf16.xpose.msra.mxu1 %v785_v0  ;;  %v794_v4 = vld [vmem:[%s1143_s5 + $0x20] sm:$0xff]   ;;  %v790_v7 = vld [vmem:[%s1150_s7 + $0x28] sm:$0xff]   ;;  %v791_v8 = vld [vmem:[%s1150_s7 + $0x30] sm:$0xff]   ;;  %s495_s19 = sshll.u32 %s1173_s8, 4  ;;  %s479_s12 = scalar_lea.sflag [#allocation4], %s1139_s4  ;;  %s1192_s19 = int_to_ptr.vmem [resolvable:$true] %s495_s19 }
  0x57   : > { %668 = vmatprep.subr.bf16.mxu0 %v786_v1  ;;  %699 = vmatprep.subr.bf16.mxu1 %v786_v1  ;;  %v789_v6 = vld [vmem:[%s1150_s7 + $0x20] sm:$0xff]   ;;  %v792_v9 = vld [vmem:[%s1150_s7 + $0x38] sm:$0xff]   ;;  %v795_v10 = vld [vmem:[%s1143_s5 + $0x8] sm:$0xff]   ;;  %s861_s15 = scalar_lea.vmem %s1192_s19, 2048  ;;  %p1260_p3 = scmp.ne.s32.totalorder %s1254_s22, 0 }
  0x58   : > { %682 = vmatprep.mubr.bf16.mxu0 %v793_v3  ;;  %690 = vmatprep.mubr.bf16.mxu1 %v794_v4  ;;  %v796_v11 = vld [vmem:[%s1143_s5 + $0x28] sm:$0xff]   ;;  %v797_v12 = vld [vmem:[%s1143_s5 + $0x10] sm:$0xff]   ;;  %v799_v14 = vld [vmem:[%s1143_s5 + $0x18] sm:$0xff]   ;;  %p862_p0 = scmp.ne.s32.totalorder %s1192_s19, %s861_s15  ;;  %s953_s26 = smov [#allocation7]  }
  0x59   : > { %v798_v13 = vld [vmem:[%s1143_s5 + $0x30] sm:$0xff]   ;;  %v800_v15 = vld [vmem:[%s1143_s5 + $0x38] sm:$0xff]   ;;  %s865_s16 = sshll.u32 %s953_s26, 4  ;;  %s866_s16 = int_to_ptr.vmem [resolvable:$false] %s865_s16 }
  0x5a   : > { %p863_p12 = pnand %p862_p0, %p1260_p3  ;;  %s867_s20 = scalar_lea.vmem %s866_s16, 4096 }
  0x5b   : > { %p868_p7 = scmp.lt.s32.totalorder %s1192_s19, %s866_s16  ;;  %p869_p10 = scmp.lt.s32.totalorder %s867_s20, %s861_s15 }
  0x5c   : > { %p864_p13 = pneg %p863_p12 }
  0x5d   : > { %p870_p9 = por %p869_p10, %p868_p7 }
  0x5e   : > { %669 = vmatpush3.bf16.xpose.msra.mxu0 %v786_v1  ;;  %707 = vmatpush3.bf16.xpose.msra.mxu1 %v786_v1 }
  0x5f   : > { %670 = vmatprep.subr.bf16.mxu0 %v787_v2  ;;  %700 = vmatprep.subr.bf16.mxu1 %v787_v2  ;;  %p871_p11 = pnand %p870_p9, %p864_p13 }
  0x66   : > { %671 = vmatpush3.bf16.xpose.msra.mxu0 %v787_v2  ;;  %708 = vmatpush3.bf16.xpose.msra.mxu1 %v787_v2 }
  0x67   : > { %672 = vmatprep.subr.bf16.mxu0 %v788_v5  ;;  %701 = vmatprep.subr.bf16.mxu1 %v788_v5 }
  0x6e   : > { %673 = vmatpush3.bf16.xpose.msra.mxu0 %v788_v5  ;;  %709 = vmatpush3.bf16.xpose.msra.mxu1 %v788_v5 }
  0x6f   : > { %674 = vmatprep.subr.bf16.mxu0 %v789_v6  ;;  %702 = vmatprep.subr.bf16.mxu1 %v789_v6 }
  0x76   : > { %675 = vmatpush3.bf16.xpose.msra.mxu0 %v789_v6  ;;  %710 = vmatpush3.bf16.xpose.msra.mxu1 %v789_v6 }
  0x77   : > { %676 = vmatprep.subr.bf16.mxu0 %v790_v7  ;;  %703 = vmatprep.subr.bf16.mxu1 %v790_v7 }
  0x7e   : > { %677 = vmatpush3.bf16.xpose.msra.mxu0 %v790_v7  ;;  %711 = vmatpush3.bf16.xpose.msra.mxu1 %v790_v7 }
  0x7f   : > { %678 = vmatprep.subr.bf16.mxu0 %v791_v8  ;;  %704 = vmatprep.subr.bf16.mxu1 %v791_v8 }
  0x86   : > { %679 = vmatpush3.bf16.xpose.msra.mxu0 %v791_v8  ;;  %712 = vmatpush3.bf16.xpose.msra.mxu1 %v791_v8 }
  0x87   : > { %680 = vmatprep.subr.bf16.mxu0 %v792_v9  ;;  %705 = vmatprep.subr.bf16.mxu1 %v792_v9 }
  0x8e   : > { %681 = vmatpush3.bf16.xpose.msra.mxu0 %v792_v9  ;;  %713 = vmatpush3.bf16.xpose.msra.mxu1 %v792_v9 }
  0x95   : > { %683 = vmatmul.mubr.bf16.vlgmr.msra.gmra.mrb[0].mxu0 %v795_v10  ;;  %691 = vmatmul.mubr.bf16.vlgmr.msra.gmra.mrb[0].mxu1 %v796_v11 }
  0x96   : > { %686 = vmatprep.mubr.bf16.mxu0 %v797_v12  ;;  %694 = vmatprep.mubr.bf16.mxu1 %v798_v13 }
  0x9d   : > { %687 = vmatmul.mubr.bf16.gmra.mrb[4].mxu0 %v799_v14  ;;  %695 = vmatmul.mubr.bf16.gmra.mrb[4].mxu1 %v800_v15 }
 0x168   : > { %v684_v16 = vpop.f32.mrb[0].mxu0  ;;  %v692_v17 = vpop.f32.mrb[0].mxu1 }
 0x169   : > { %464 = vst [vmem:[%s1173_s8 + $0x10] sm:$0xff] %v684_v16  ;;  %472 = vst [vmem:[%s1173_s8 + $0x50] sm:$0xff] %v692_v17  ;;  %v399_v18 = vpop.f32.mrb[1].mxu0  ;;  %v431_v19 = vpop.f32.mrb[1].mxu1 }
 0x16a   : > { %462 = vst [vmem:[%s1173_s8] sm:$0xff] %v399_v18  ;;  %470 = vst [vmem:[%s1173_s8 + $0x40] sm:$0xff] %v431_v19  ;;  %v685_v20 = vpop.f32.mrb[2].mxu0  ;;  %v693_v21 = vpop.f32.mrb[2].mxu1 }
 0x16b   : > { %465 = vst [vmem:[%s1173_s8 + $0x18] sm:$0xff] %v685_v20  ;;  %473 = vst [vmem:[%s1173_s8 + $0x58] sm:$0xff] %v693_v21  ;;  %v402_v22 = vpop.f32.mrb[3].mxu0  ;;  %v434_v23 = vpop.f32.mrb[3].mxu1 }
 0x16c   : > { %463 = vst [vmem:[%s1173_s8 + $0x8] sm:$0xff] %v402_v22  ;;  %471 = vst [vmem:[%s1173_s8 + $0x48] sm:$0xff] %v434_v23 }
 0x170   : > { %v688_v24 = vpop.f32.mrb[4].mxu0  ;;  %v696_v25 = vpop.f32.mrb[4].mxu1 }
 0x171   : > { %468 = vst [vmem:[%s1173_s8 + $0x30] sm:$0xff] %v688_v24  ;;  %476 = vst [vmem:[%s1173_s8 + $0x70] sm:$0xff] %v696_v25  ;;  %v415_v26 = vpop.f32.mrb[5].mxu0  ;;  %v447_v27 = vpop.f32.mrb[5].mxu1 }
 0x172   : > { %466 = vst [vmem:[%s1173_s8 + $0x20] sm:$0xff] %v415_v26  ;;  %474 = vst [vmem:[%s1173_s8 + $0x60] sm:$0xff] %v447_v27  ;;  %v689_v28 = vpop.f32.mrb[6].mxu0  ;;  %v697_v29 = vpop.f32.mrb[6].mxu1 }
 0x173   : > { %469 = vst [vmem:[%s1173_s8 + $0x38] sm:$0xff] %v689_v28  ;;  %477 = vst [vmem:[%s1173_s8 + $0x78] sm:$0xff] %v697_v29  ;;  %v418_v30 = vpop.f32.mrb[7].mxu0  ;;  %v450_v31 = vpop.f32.mrb[7].mxu1 }
 0x174   : > { %467 = vst [vmem:[%s1173_s8 + $0x28] sm:$0xff] %v418_v30  ;;  %475 = vst [vmem:[%s1173_s8 + $0x68] sm:$0xff] %v450_v31 }
 0x175   : > { %874 = shalt.err (!%p871_p11)
}
 0x176   : > { %s875_s27 = scalar_lea.hbm %s1190_s3, 2048  ;;  %s879_s5 = scalar_lea.hbm %s1249_s2, 4096 }
 0x177   : > { %p876_p1 = scmp.ne.s32.totalorder %s1190_s3, %s875_s27  ;;  %p880_p5 = scmp.lt.u32.totalorder %s1190_s3, %s1249_s2 }
 0x178   : > { %p881_p4 = scmp.lt.u32.totalorder %s879_s5, %s875_s27  ;;  %p883_p0 = scmp.lt.u32.totalorder %s875_s27, %s1190_s3 }
 0x179   : > { %p877_p6 = pnand %p876_p1, %p1260_p3 }
 0x17a   : > { %p882_p8 = por %p881_p4, %p880_p5 }
 0x17b   : > { %p878_p2 = pneg %p877_p6 }
 0x17c   : > { %p884_p12 = por %p883_p0, %p882_p8 }
 0x17e   : > { %p885_p13 = pnand %p884_p12, %p878_p2 }
 0x180   : > { %888 = shalt.err (!%p885_p13)
}
 0x181   : > { %s954_s21 = smov 128   ;;  %s955_s8 = smov 8  }
 0x182   : > { %718 = dma.vmem_to_hbm [thread:$0]  (%p1260_p3), %s1192_s19, 2048, %s1190_s3, %s479_s12, %s954_s21, %s954_s21, %s955_s8  }
 0x183 PF: > { %s510_s18 = sand.u32 1, %s927_s9   ;;  %p1261_p7 = scmp.ne.s32.totalorder %s1255_s24, 0 }
 0x184   : > { %p1262_p10 = scmp.ge.s32.totalorder %s947_s14, 2  ;;  %s511_s28 = scalar_lea.sflag [#allocation4], %s510_s18 }
 0x186   : > { %p728_p9 = pnand %p1262_p10, %p1261_p7 }
 0x188   : > { %922 = dma.done.wait (!%p728_p9), %s511_s28, 2048  }
 0x189   : > { %924 = vsyncadd (!%p728_p9), %s511_s28, 4294965248  ;;  %s21_s14 = sadd.s32 1, %s947_s14   ;;  %s1263_s9 = smov %s931_s10 }
 0x18a   : > { %p18_p11 = scmp.ge.s32.totalorder %s21_s14, 4   ;;  %s1264_s10 = smov %s935_s11 }
 0x18b   : > { %s1265_s11 = smov %s1027_s23  ;;  %s1266_s12 = smov %s943_s13 }
 0x18c   : > { %s1267_s13 = smov %s1269_s17  ;;  %20 = sbr.rel (!%p18_p11) target bundleno = 8 (0x8), region = 86 }
 0x193   :  { %516 = vsyncpa [#allocation3], 1 }
 0x194   :  { %518 = vsyncpa [#allocation3 + $0x1], 1 }
 0x195   :  { %519 = vsyncpa [#allocation6], 1 }
 0x196   :  { %521 = vsyncpa [#allocation6 + $0x1], 1 }
 0x197   :  { %522 = vsyncpa [#allocation4], 1 }
 0x198   :  { %524 = vsyncpa [#allocation4 + $0x1], 1 }

</bundles_post_ra>
